<compile_context>
chip_gen: v6e
topology: v6e:2x2x1
jax: 0.10.0
libtpu: 0.0.40
codegen_flags: <defaults>
</compile_context>

<pallas_src>
import functools
import math

import jax
import jax.numpy as jnp
from jax import lax
from jax.experimental import pallas as pl
from jax.experimental.pallas import tpu as pltpu

_BF = jnp.bfloat16


def _round_up(x, m):
    return (x + m - 1) // m * m


# ----------------------------------------------------------------------------
# Fused Pallas kernel:  out = act( (X @ W) * scale + shift [+ residual] )
# ----------------------------------------------------------------------------
@functools.lru_cache(maxsize=None)
def _make_kernel(act, has_res):
    def _epilogue(acc, s, b, r):
        y = acc * s + b
        if r is not None:
            y = y + r.astype(jnp.float32)
        if act == "relu":
            y = jnp.maximum(y, 0.0)
        elif act == "tanh":
            y = jnp.tanh(y)
        return y

    if has_res:
        def kernel(x_ref, w_ref, s_ref, b_ref, r_ref, o_ref, acc_ref):
            k = pl.program_id(2)

            @pl.when(k == 0)
            def _():
                acc_ref[...] = jnp.zeros_like(acc_ref)

            acc_ref[...] += jnp.dot(x_ref[...], w_ref[...],
                                    preferred_element_type=jnp.float32)

            @pl.when(k == pl.num_programs(2) - 1)
            def _():
                o_ref[...] = _epilogue(acc_ref[...], s_ref[...], b_ref[...],
                                       r_ref[...]).astype(o_ref.dtype)
    else:
        def kernel(x_ref, w_ref, s_ref, b_ref, o_ref, acc_ref):
            k = pl.program_id(2)

            @pl.when(k == 0)
            def _():
                acc_ref[...] = jnp.zeros_like(acc_ref)

            acc_ref[...] += jnp.dot(x_ref[...], w_ref[...],
                                    preferred_element_type=jnp.float32)

            @pl.when(k == pl.num_programs(2) - 1)
            def _():
                o_ref[...] = _epilogue(acc_ref[...], s_ref[...], b_ref[...],
                                       None).astype(o_ref.dtype)

    return kernel


def _choose_tiles(M, K, N):
    """Adaptive tiles: big tm for huge-M layers, single k-step when K<=2048,
    tn as wide as the (padded) N allows.  Keeps double-buffered VMEM <~10MiB."""
    Kp = _round_up(K, 128)
    if Kp <= 2048:
        tk = Kp                                   # single k-step
    else:
        tk = 1024
        Kp = _round_up(K, tk)
    Np = _round_up(N, 128)
    if M <= 256 and Np % 512 == 0:
        tn = 512
    elif Np % 256 == 0:
        tn = 256
    else:
        tn = 128
    if M >= (1 << 18):
        tm = 2048
    elif M >= 1024:
        tm = 1024
    else:
        tm = _round_up(M, 16)
    Mp = _round_up(M, tm)
    return Mp, Kp, Np, tm, tk, tn


@functools.lru_cache(maxsize=None)
def _get_matmul_call(Mp, Kp, Np, tm, tk, tn, act, has_res):
    in_specs = [
        pl.BlockSpec((tm, tk), lambda i, j, k: (i, k)),
        pl.BlockSpec((tk, tn), lambda i, j, k: (k, j)),
        pl.BlockSpec((1, tn), lambda i, j, k: (0, j)),
        pl.BlockSpec((1, tn), lambda i, j, k: (0, j)),
    ]
    if has_res:
        in_specs.append(pl.BlockSpec((tm, tn), lambda i, j, k: (i, j)))
    call = pl.pallas_call(
        _make_kernel(act, has_res),
        out_shape=jax.ShapeDtypeStruct((Mp, Np), _BF),
        grid_spec=pltpu.PrefetchScalarGridSpec(
            num_scalar_prefetch=0,
            grid=(Mp // tm, Np // tn, Kp // tk),
            in_specs=in_specs,
            out_specs=pl.BlockSpec((tm, tn), lambda i, j, k: (i, j)),
            scratch_shapes=[pltpu.VMEM((tm, tn), jnp.float32)],
        ),
        compiler_params=pltpu.CompilerParams(
            dimension_semantics=("parallel", "parallel", "arbitrary")),
    )
    # jit so identical layer configurations reuse a single compiled executable.
    return jax.jit(call)


def fused_matmul(x_parts, w, scale, shift, act="none", residual=None):
    """x_parts: (M,K) array or list of (M,k_i) pieces (concatenated along K).
    w: (K,N).  scale/shift: (N,) f32.  Returns (M,N) bf16."""
    if not isinstance(x_parts, (list, tuple)):
        x_parts = [x_parts]
    M = x_parts[0].shape[0]
    K = sum(p.shape[1] for p in x_parts)
    N = w.shape[1]
    Mp, Kp, Np, tm, tk, tn = _choose_tiles(M, K, N)

    parts = [p.astype(_BF) for p in x_parts]
    if Kp > K:                       # pad K inside the (single) concatenate
        parts.append(jnp.zeros((M, Kp - K), _BF))
    x_p = parts[0] if len(parts) == 1 else jnp.concatenate(parts, axis=1)
    if Mp > M:
        x_p = jnp.pad(x_p, ((0, Mp - M), (0, 0)))

    w_p = w.astype(_BF)
    if Kp > K or Np > N:
        w_p = jnp.pad(w_p, ((0, Kp - K), (0, Np - N)))
    s_p = scale.astype(jnp.float32)
    b_p = shift.astype(jnp.float32)
    if Np > N:
        s_p = jnp.pad(s_p, (0, Np - N))
        b_p = jnp.pad(b_p, (0, Np - N))
    s_p = s_p.reshape(1, Np)
    b_p = b_p.reshape(1, Np)

    args = [x_p, w_p, s_p, b_p]
    if residual is not None:
        r_p = residual.astype(_BF)
        if Mp > M or Np > N:
            r_p = jnp.pad(r_p, ((0, Mp - M), (0, Np - N)))
        args.append(r_p)

    out = _get_matmul_call(Mp, Kp, Np, tm, tk, tn, act,
                           residual is not None)(*args)
    if Mp > M or Np > N:
        out = out[:M, :N]
    return out


# ----------------------------------------------------------------------------
# Conv wrappers (patch slicing in plain JAX, matmul + epilogue in Pallas)
# ----------------------------------------------------------------------------
def conv2d_nhwc(x, w_oihw, stride, padding, scale, shift, act, residual=None):
    """x: (B,H,W,C); w: (Cout,Cin,kh,kw) (PyTorch layout)."""
    B, H, W, C = x.shape
    Cout, Cin, kh, kw = w_oihw.shape
    x = x.astype(_BF)
    if padding:
        x = jnp.pad(x, ((0, 0), (padding, padding), (padding, padding), (0, 0)))
    Ho = (H + 2 * padding - kh) // stride + 1
    Wo = (W + 2 * padding - kw) // stride + 1
    parts = []
    for i in range(kh):
        for j in range(kw):
            sl = lax.slice(
                x, (0, i, j, 0),
                (B, i + stride * (Ho - 1) + 1, j + stride * (Wo - 1) + 1, C),
                (1, stride, stride, 1))
            parts.append(sl.reshape(B * Ho * Wo, C))
    wm = jnp.transpose(w_oihw, (2, 3, 1, 0)).reshape(kh * kw * Cin, Cout)
    res = None if residual is None else residual.reshape(B * Ho * Wo, Cout)
    out = fused_matmul(parts, wm, scale, shift, act, res)
    return out.reshape(B, Ho, Wo, Cout)


def conv_transpose2d_s1(x, w_iohw, padding, scale, shift, act):
    """PyTorch ConvTranspose2d with stride 1; w: (Cin,Cout,kh,kw)."""
    k = w_iohw.shape[2]
    w_conv = jnp.flip(jnp.transpose(w_iohw, (1, 0, 2, 3)), axis=(2, 3))
    return conv2d_nhwc(x, w_conv, 1, k - 1 - padding, scale, shift, act)


def conv_transpose2d_s2_phase(x, w_iohw, scale, shift, act):
    """PyTorch ConvTranspose2d(k=4, stride=2, padding=1) as 4 sub-pixel phase
    convolutions folded into the matmul N dimension (evaluated at the INPUT
    resolution).  x: (B,Hi,Wi,Cin); w: (Cin,Cout,4,4) -> (B,2Hi,2Wi,Cout)."""
    B, Hi, Wi, Cin = x.shape
    Cout = w_iohw.shape[1]
    xp = jnp.pad(x.astype(_BF), ((0, 0), (1, 1), (1, 1), (0, 0)))
    parts = []
    for dy in range(3):
        for dx in range(3):
            parts.append(lax.slice(xp, (0, dy, dx, 0),
                                   (B, dy + Hi, dx + Wi, Cin)
                                   ).reshape(B * Hi * Wi, Cin))
    # Output row 2y+py reads X[y-1] (ki=3) and X[y] (ki=1) for py=0,
    #                        X[y] (ki=2) and X[y+1] (ki=0) for py=1.
    # Rows = input offset dy in {-1,0,+1}, cols = transposed-conv kernel row ki.
    T0 = jnp.array([[0, 0, 0, 1], [0, 1, 0, 0], [0, 0, 0, 0]], jnp.float32)
    T1 = jnp.array([[0, 0, 0, 0], [0, 0, 1, 0], [1, 0, 0, 0]], jnp.float32)
    Ts = (T0, T1)
    wf = w_iohw.astype(jnp.float32)             # (Cin, Cout, 4, 4)
    cols = []
    for py in range(2):
        for px in range(2):
            weff = jnp.einsum("dk,el,iokl->deio", Ts[py], Ts[px], wf)
            cols.append(weff.reshape(9 * Cin, Cout))
    wm = jnp.concatenate(cols, axis=1)          # (9*Cin, 4*Cout)
    s4 = jnp.tile(scale.astype(jnp.float32), 4)
    b4 = jnp.tile(shift.astype(jnp.float32), 4)
    out = fused_matmul(parts, wm, s4, b4, act)  # (B*Hi*Wi, 4*Cout)
    out = out.reshape(B, Hi, Wi, 2, 2, Cout)
    out = jnp.transpose(out, (0, 1, 3, 2, 4, 5)).reshape(
        B, 2 * Hi, 2 * Wi, Cout)
    return out


def conv1d_ntc(x, w_oik, bias, stride, padding):
    """x: (B,T,Cin); w: (Cout,Cin,k)."""
    B, T, C = x.shape
    Cout, Cin, k = w_oik.shape
    xp = jnp.pad(x.astype(_BF), ((0, 0), (padding, padding), (0, 0)))
    To = (T + 2 * padding - k) // stride + 1
    parts = [lax.slice(xp, (0, i, 0), (B, i + stride * (To - 1) + 1, C),
                       (1, stride, 1)).reshape(B * To, C) for i in range(k)]
    wm = jnp.transpose(w_oik, (2, 1, 0)).reshape(k * Cin, Cout)
    out = fused_matmul(parts, wm, jnp.ones((Cout,), jnp.float32), bias, "none")
    return out.reshape(B, To, Cout)


def conv3d_nthwc(x, w, scale, shift, act):
    """x: (N,T,H,W,C); w: (Cout,Cin,3,3,3); stride 1, pad 1."""
    B, T, H, W, C = x.shape
    Cout = w.shape[0]
    xp = jnp.pad(x.astype(_BF), ((0, 0), (1, 1), (1, 1), (1, 1), (0, 0)))
    parts = [lax.slice(xp, (0, a, i, j, 0), (B, a + T, i + H, j + W, C)
                       ).reshape(B * T * H * W, C)
             for a in range(3) for i in range(3) for j in range(3)]
    wm = jnp.transpose(w, (2, 3, 4, 1, 0)).reshape(27 * C, Cout)
    out = fused_matmul(parts, wm, scale, shift, act)
    return out.reshape(B, T, H, W, Cout)


def upblock_phase_conv3d(x, w, scale, shift):
    """upBlock = nearest (1,2,2) upsample + Conv3d(k=3,p=1) + BN + ReLU, fused
    as 4 sub-pixel phase convolutions at the pre-upsample resolution.
    x: (B,T,H,W,Cin); w: (Cout,Cin,3,3,3) -> (B,T,2H,2W,Cout)."""
    B, T, H, W, Cin = x.shape
    Cout = w.shape[0]
    xp = jnp.pad(x.astype(_BF), ((0, 0), (1, 1), (1, 1), (1, 1), (0, 0)))
    parts = [lax.slice(xp, (0, a, dy, dx, 0), (B, a + T, dy + H, dx + W, Cin)
                       ).reshape(B * T * H * W, Cin)
             for a in range(3) for dy in range(3) for dx in range(3)]
    # Phase py=0 reads input rows {y-1 (ki=0), y (ki=1 and ki=2)};
    # phase py=1 reads rows {y (ki=0 and ki=1), y+1 (ki=2)}  (same for columns).
    S0 = jnp.array([[1, 0, 0], [0, 1, 1], [0, 0, 0]], jnp.float32)
    S1 = jnp.array([[0, 0, 0], [1, 1, 0], [0, 0, 1]], jnp.float32)
    Ss = (S0, S1)
    wf = w.astype(jnp.float32)                  # (Cout,Cin,3,3,3)
    cols = []
    for py in range(2):
        for px in range(2):
            weff = jnp.einsum("dk,el,oiakl->adeio", Ss[py], Ss[px], wf)
            cols.append(weff.reshape(27 * Cin, Cout))
    wm = jnp.concatenate(cols, axis=1)          # (27*Cin, 4*Cout)
    s4 = jnp.tile(scale.astype(jnp.float32), 4)
    b4 = jnp.tile(shift.astype(jnp.float32), 4)
    out = fused_matmul(parts, wm, s4, b4, "relu")
    out = out.reshape(B, T, H, W, 2, 2, Cout)
    out = jnp.transpose(out, (0, 1, 2, 4, 3, 5, 6)).reshape(
        B, T, 2 * H, 2 * W, Cout)
    return out


def fold_bn(bn, conv_bias=None, eps=1e-5):
    scale = bn["gamma"] / jnp.sqrt(bn["var"] + eps)
    shift = bn["beta"] - bn["mean"] * scale
    if conv_bias is not None:
        shift = shift + conv_bias * scale
    return scale, shift


# ----------------------------------------------------------------------------
# Deterministic parameter initialization (shapes follow the PyTorch __init__)
# ----------------------------------------------------------------------------
def init_params(key):
    keys = iter(jax.random.split(key, 256))

    def nxt():
        return next(keys)

    def w_conv(shape):  # (Cout, Cin, *k)
        fan_in = math.prod(shape[1:])
        return jax.random.normal(nxt(), shape, jnp.float32) * math.sqrt(
            2.0 / fan_in)

    def w_deconv(shape):  # (Cin, Cout, kh, kw)
        fan_in = shape[0] * shape[2] * shape[3]
        return jax.random.normal(nxt(), shape, jnp.float32) * math.sqrt(
            2.0 / fan_in)

    def vec(c, mean=0.0, std=0.1):
        return mean + std * jax.random.normal(nxt(), (c,), jnp.float32)

    def bn(c):
        return dict(gamma=vec(c, 1.0), beta=vec(c), mean=vec(c),
                    var=jnp.abs(vec(c, 1.0)))

    d, ngf = 128, 32
    p = {}
    # ---- STAGE1_G (VideoGenerator, use_window=True, use_256=False) ----
    p["window"] = dict(w=w_conv((256, 64, 64)), b=vec(256))
    p["deconv1"] = dict(w=w_deconv((256, d * 8, 4, 4)), b=vec(d * 8))
    p["bn1"] = bn(d * 8)
    p["deconv2"] = dict(w=w_deconv((d * 8, d * 4, 4, 4)), b=vec(d * 4))
    p["bn2"] = bn(d * 4)
    p["deconv3"] = dict(w=w_deconv((d * 4, d * 2, 4, 4)), b=vec(d * 2))
    p["bn3"] = bn(d * 2)
    p["deconv4"] = dict(w=w_deconv((d * 2, d, 4, 4)), b=vec(d))
    p["bn4"] = bn(d)
    p["deconv5"] = dict(w=w_deconv((d, d // 2, 4, 4)), b=vec(d // 2))
    p["bn5"] = bn(d // 2)
    p["deconv7"] = dict(w=w_deconv((d // 2, 3, 4, 4)), b=vec(3))
    # ---- STAGE2 encoder ----
    p["enc1_w"] = w_conv((ngf, 3, 3, 3))
    p["enc2_w"] = w_conv((ngf * 2, ngf, 4, 4))
    p["enc2_bn"] = bn(ngf * 2)
    p["enc3_w"] = w_conv((ngf * 4, ngf * 2, 4, 4))
    p["enc3_bn"] = bn(ngf * 4)
    # ---- hr_joint ----
    p["joint_w"] = w_conv((ngf * 4, 256 + ngf * 4, 3, 3))
    p["joint_bn"] = bn(ngf * 4)
    # ---- 4 ResBlocks ----
    p["resblocks"] = [dict(w1=w_conv((ngf * 4, ngf * 4, 3, 3)), bn1=bn(ngf * 4),
                           w2=w_conv((ngf * 4, ngf * 4, 3, 3)), bn2=bn(ngf * 4))
                      for _ in range(4)]
    # ---- up blocks (Conv3d) ----
    p["up1"] = dict(w=w_conv((ngf * 2, ngf * 4, 3, 3, 3)), bn=bn(ngf * 2))
    p["up2"] = dict(w=w_conv((ngf, ngf * 2, 3, 3, 3)), bn=bn(ngf))
    p["up3"] = dict(w=w_conv((ngf // 2, ngf, 3, 3, 3)), bn=bn(ngf // 2))
    p["up4"] = dict(w=w_conv((ngf // 4, ngf // 2, 3, 3, 3)), bn=bn(ngf // 4))
    # ---- final img head ----
    p["img_w"] = w_conv((3, ngf // 4, 3, 3, 3))
    return p


# ----------------------------------------------------------------------------
# STAGE2_G forward (residual_video=False, train=False)
# ----------------------------------------------------------------------------
def stage2_g_forward(p, audio):
    """audio: (B, T, 64) f32.  Returns (B, num_frames, 3, 512, 512) f32."""
    B = audio.shape[0]

    # ---------- STAGE1_G (VideoGenerator, return_feature=True) ----------
    emb = conv1d_ntc(audio, p["window"]["w"], p["window"]["b"],
                     stride=4, padding=30)                      # (B, F, 256)
    F_ = emb.shape[1]
    x = emb.reshape(B * F_, 1, 1, 256)

    s, b = fold_bn(p["bn1"], p["deconv1"]["b"])
    x = conv_transpose2d_s1(x, p["deconv1"]["w"], 0, s, b, "relu")      # 4x4
    s, b = fold_bn(p["bn2"], p["deconv2"]["b"])
    x = conv_transpose2d_s2_phase(x, p["deconv2"]["w"], s, b, "relu")   # 8x8
    s, b = fold_bn(p["bn3"], p["deconv3"]["b"])
    x = conv_transpose2d_s2_phase(x, p["deconv3"]["w"], s, b, "relu")   # 16
    s, b = fold_bn(p["bn4"], p["deconv4"]["b"])
    x = conv_transpose2d_s2_phase(x, p["deconv4"]["w"], s, b, "relu")   # 32
    s, b = fold_bn(p["bn5"], p["deconv5"]["b"])
    x = conv_transpose2d_s2_phase(x, p["deconv5"]["w"], s, b, "relu")   # 64
    stage1 = conv_transpose2d_s2_phase(x, p["deconv7"]["w"],
                                       jnp.ones((3,), jnp.float32),
                                       p["deconv7"]["b"], "tanh")  # (BF,128,128,3)

    # ---------- STAGE2 encoder ----------
    e = conv2d_nhwc(stage1, p["enc1_w"], 1, 1,
                    jnp.ones((32,), jnp.float32),
                    jnp.zeros((32,), jnp.float32), "relu")       # 128x128x32
    s, b = fold_bn(p["enc2_bn"])
    e = conv2d_nhwc(e, p["enc2_w"], 2, 1, s, b, "relu")          # 64x64x64
    s, b = fold_bn(p["enc3_bn"])
    e = conv2d_nhwc(e, p["enc3_w"], 2, 1, s, b, "relu")          # 32x32x128

    # ---------- concat with audio code + hr_joint ----------
    c_code = jnp.broadcast_to(emb.reshape(B * F_, 1, 1, 256).astype(_BF),
                              (B * F_, 32, 32, 256))
    h = jnp.concatenate([e, c_code], axis=-1)                    # 32x32x384
    s, b = fold_bn(p["joint_bn"])
    h = conv2d_nhwc(h, p["joint_w"], 1, 1, s, b, "relu")         # 32x32x128

    # ---------- 4 ResBlocks (residual add + relu fused in the kernel) ----------
    for rb in p["resblocks"]:
        s1, b1 = fold_bn(rb["bn1"])
        t = conv2d_nhwc(h, rb["w1"], 1, 1, s1, b1, "relu")
        s2, b2 = fold_bn(rb["bn2"])
        h = conv2d_nhwc(t, rb["w2"], 1, 1, s2, b2, "relu", residual=h)

    # (B*F,32,32,128) -> (B,F,32,32,128)  ==  PyTorch (B,128,F,32,32)
    h = h.reshape(B, F_, 32, 32, -1)

    # ---------- upBlocks: fused nearest (1,2,2) upsample + Conv3d + BN + ReLU
    for name in ("up1", "up2", "up3", "up4"):
        s, b = fold_bn(p[name]["bn"])
        h = upblock_phase_conv3d(h, p[name]["w"], s, b)

    # ---------- img head: Conv3d -> tanh ----------
    img = conv3d_nthwc(h, p["img_w"], jnp.ones((3,), jnp.float32),
                       jnp.zeros((3,), jnp.float32), "tanh")  # (B,F,512,512,3)

    # back to PyTorch layout (B, F, 3, 512, 512)
    return jnp.transpose(img, (0, 1, 4, 2, 3)).astype(jnp.float32)


# ----------------------------------------------------------------------------
if __name__ == "__main__":
    key = jax.random.PRNGKey(0)
    pkey, dkey = jax.random.split(key)
    params = init_params(pkey)

    # Input to STAGE2_G.forward: audio features (B, T, dim_neck*2=64).
    # Conv1d(kernel=64, stride=4, pad=30): T=4 -> num_frames=1 (smallest case).
    B, T = 1, 4
    audio = 0.1 * jax.random.normal(dkey, (B, T, 64), jnp.float32)

    out = stage2_g_forward(params, audio)
    out = jax.block_until_ready(out)

    assert out.shape == (B, 1, 3, 512, 512), out.shape
    assert bool(jnp.all(jnp.isfinite(out)))
    print("KERNEL_OK")
</pallas_src>

<mosaic_0001>
module attributes {stable_mosaic.version = 11 : i64} {
  func.func @kernel(%arg0: i32, %arg1: i32, %arg2: i32, %arg3: memref<16x1024xbf16, #tpu.memory_space<vmem>>, %arg4: memref<1024x256xbf16, #tpu.memory_space<vmem>>, %arg5: memref<1x256xf32, #tpu.memory_space<vmem>>, %arg6: memref<1x256xf32, #tpu.memory_space<vmem>>, %arg7: memref<16x256xbf16, #tpu.memory_space<vmem>>, %arg8: memref<16x256xf32, #tpu.memory_space<vmem>>) attributes {dimension_semantics = [#tpu.dimension_semantics<parallel>, #tpu.dimension_semantics<parallel>, #tpu.dimension_semantics<arbitrary>], iteration_bounds = array<i64: 1, 1, 4>, scalar_prefetch = 0 : i64, scratch_operands = 1 : i64, tpu.core_type = #tpu.core_type<tc>, window_params = [{transform_indices = @transform_0, window_bounds = array<i64: 16, 1024>}, {transform_indices = @transform_1, window_bounds = array<i64: 1024, 256>}, {transform_indices = @transform_2, window_bounds = array<i64: 1, 256>}, {transform_indices = @transform_3, window_bounds = array<i64: 1, 256>}, {transform_indices = @transform_4, window_bounds = array<i64: 16, 256>}]} {
    %c0_i32 = arith.constant 0 : i32
    %0 = arith.cmpi eq, %arg2, %c0_i32 : i32
    %1 = arith.extui %0 : i1 to i32
    %c0_i32_0 = arith.constant 0 : i32
    %2 = arith.cmpi ne, %1, %c0_i32_0 : i32
    scf.if %2 {
      %cst_9 = arith.constant 0.000000e+00 : f32
      %12 = vector.broadcast %cst_9 : f32 to vector<16x256xf32>
      %c0_10 = arith.constant 0 : index
      %c0_11 = arith.constant 0 : index
      %13 = vector.load %arg8[%c0_10, %c0_11] : memref<16x256xf32, #tpu.memory_space<vmem>>, vector<16x256xf32>
      tpu.vector_store %arg8[%c0_10, %c0_11], %12 {strides = array<i32>} : memref<16x256xf32, #tpu.memory_space<vmem>>, vector<16x256xf32>,
    } else {
    }
    %c0 = arith.constant 0 : index
    %c0_1 = arith.constant 0 : index
    %3 = vector.load %arg8[%c0, %c0_1] : memref<16x256xf32, #tpu.memory_space<vmem>>, vector<16x256xf32>
    %c0_2 = arith.constant 0 : index
    %c0_3 = arith.constant 0 : index
    %4 = vector.load %arg3[%c0_2, %c0_3] : memref<16x1024xbf16, #tpu.memory_space<vmem>>, vector<16x1024xbf16>
    %c0_4 = arith.constant 0 : index
    %c0_5 = arith.constant 0 : index
    %5 = vector.load %arg4[%c0_4, %c0_5] : memref<1024x256xbf16, #tpu.memory_space<vmem>>, vector<1024x256xbf16>
    %cst = arith.constant dense<0.000000e+00> : vector<16x256xf32>
    %6 = tpu.matmul %4, %5, %cst {dimension_numbers = #tpu.dot_dimension_numbers<[1], [0], [0], [1], [0, 0, 1, 1], [], []>} : vector<16x1024xbf16>, vector<1024x256xbf16>, vector<16x256xf32> -> vector<16x256xf32>
    %7 = arith.addf %3, %6 : vector<16x256xf32>
    %c0_6 = arith.constant 0 : index
    %c0_7 = arith.constant 0 : index
    %8 = vector.load %arg8[%c0_6, %c0_7] : memref<16x256xf32, #tpu.memory_space<vmem>>, vector<16x256xf32>
    tpu.vector_store %arg8[%c0_6, %c0_7], %7 {strides = array<i32>} : memref<16x256xf32, #tpu.memory_space<vmem>>, vector<16x256xf32>,
    %c3_i32 = arith.constant 3 : i32
    %9 = arith.cmpi eq, %arg2, %c3_i32 : i32
    %10 = arith.extui %9 : i1 to i32
    %c0_i32_8 = arith.constant 0 : i32
    %11 = arith.cmpi ne, %10, %c0_i32_8 : i32
    scf.if %11 {
      %c0_9 = arith.constant 0 : index
      %c0_10 = arith.constant 0 : index
      %12 = vector.load %arg8[%c0_9, %c0_10] : memref<16x256xf32, #tpu.memory_space<vmem>>, vector<16x256xf32>
      %c0_11 = arith.constant 0 : index
      %c0_12 = arith.constant 0 : index
      %13 = vector.load %arg5[%c0_11, %c0_12] : memref<1x256xf32, #tpu.memory_space<vmem>>, vector<1x256xf32>
      %c0_13 = arith.constant 0 : index
      %c0_14 = arith.constant 0 : index
      %14 = vector.load %arg6[%c0_13, %c0_14] : memref<1x256xf32, #tpu.memory_space<vmem>>, vector<1x256xf32>
      %15 = vector.broadcast %13 : vector<1x256xf32> to vector<16x256xf32>
      %16 = arith.mulf %12, %15 : vector<16x256xf32>
      %17 = vector.broadcast %14 : vector<1x256xf32> to vector<16x256xf32>
      %18 = arith.addf %16, %17 : vector<16x256xf32>
      %19 = arith.truncf %18 : vector<16x256xf32> to vector<16x256xbf16>
      %c0_15 = arith.constant 0 : index
      %c0_16 = arith.constant 0 : index
      %20 = vector.load %arg7[%c0_15, %c0_16] : memref<16x256xbf16, #tpu.memory_space<vmem>>, vector<16x256xbf16>
      tpu.vector_store %arg7[%c0_15, %c0_16], %19 {strides = array<i32>} : memref<16x256xbf16, #tpu.memory_space<vmem>>, vector<16x256xbf16>,
    } else {
    }
    return
  }
  func.func @transform_0(%arg0: i32, %arg1: i32, %arg2: i32) -> (i32, i32) {
    %c0_i32 = arith.constant 0 : i32
    return %arg0, %arg2 : i32, i32
  }
  func.func @transform_1(%arg0: i32, %arg1: i32, %arg2: i32) -> (i32, i32) {
    %c0_i32 = arith.constant 0 : i32
    return %arg2, %arg1 : i32, i32
  }
  func.func @transform_2(%arg0: i32, %arg1: i32, %arg2: i32) -> (i32, i32) {
    %c0_i32 = arith.constant 0 : i32
    %c0_i32_0 = arith.constant 0 : i32
    return %c0_i32, %arg1 : i32, i32
  }
  func.func @transform_3(%arg0: i32, %arg1: i32, %arg2: i32) -> (i32, i32) {
    %c0_i32 = arith.constant 0 : i32
    %c0_i32_0 = arith.constant 0 : i32
    return %c0_i32, %arg1 : i32, i32
  }
  func.func @transform_4(%arg0: i32, %arg1: i32, %arg2: i32) -> (i32, i32) {
    %c0_i32 = arith.constant 0 : i32
    return %arg0, %arg1 : i32, i32
  }
}

</mosaic_0001>

<bundles_post_ra>
// kernel: tpu_custom_call.1
= control target key start
LH: loop header
LB: loop body
LE: loop exit
PB: predicated region body
PF: predicated region fallthrough
CT: control target
= control target key end

     0   :  { %s2542_s0 = inlined_call_operand.hbm [shape: bf16[16,4096], index: 0, kind: input, shape index: {}]   ;;  %s2543_s1 = inlined_call_operand.hbm [shape: bf16[4096,256], index: 1, kind: input, shape index: {}]   ;;  %s2544_s2 = inlined_call_operand.hbm [shape: f32[1,256], index: 2, kind: input, shape index: {}]   ;;  %s2545_s3 = inlined_call_operand.hbm [shape: f32[1,256], index: 3, kind: input, shape index: {}]   ;;  %s2546_s4 = inlined_call_operand.hbm [shape: bf16[16,256], index: 4, kind: output, shape index: {}]  }
   0x1   :  { %2549 = sst [smem:[#allocation18_spill]] %s2542_s0 }
   0x2   :  { %2550 = sst [smem:[#allocation19_spill]] %s2544_s2 }
   0x3   :  { %2551 = sst [smem:[#allocation20_spill]] %s2545_s3 }
   0x4   :  { %9 = vsyncpa [#allocation4], 0 }
   0x5   :  { %11 = vsyncpa [#allocation4 + $0x1], 0 }
   0x6   :  { %12 = vsyncpa [#allocation7], 0 }
   0x7   :  { %14 = vsyncpa [#allocation7 + $0x1], 0 }
   0x8   :  { %15 = vsyncpa [#allocation10], 0 }
   0x9   :  { %16 = vsyncpa [#allocation5], 0  ;;  %s2217_s15 = smov 0   ;;  %s2219_s16 = smov 0  }
   0xa   :  { %s2221_s17 = smov 0   ;;  %s2223_s18 = smov 0  }
   0xb   :  { %s2225_s19 = smov 0   ;;  %s2227_s20 = smov 0  }
   0xc LB: > { %s2246_s21 = sadd.s32 4294967295, %s2177_s20   ;;  %s50_s22 = sadd.s32 1, %s2165_s17  ;;  %s2177_s20 = sphi %s2227_s20, %s22_s20   ;;  %s2173_s19 = sphi %s2225_s19, %s2569_s19   ;;  %s2169_s18 = sphi %s2223_s18, %s2568_s18   ;;  %s2165_s17 = sphi %s2221_s17, %s2567_s17   ;;  %s2161_s16 = sphi %s2219_s16, %s2566_s16   ;;  %s2157_s15 = sphi %s2217_s15, %s2565_s15  }
   0xd   : > { %p57_p0 = scmp.ne.s32.totalorder %s2165_s17, %s2161_s16  ;;  %p58_p1 = scmp.eq.s32.totalorder %s2177_s20, 0 }
   0xe   : > { %p63_p2 = scmp.ne.s32.totalorder %s2161_s16, %s2157_s15  ;;  %p2547_p3 = scmp.eq.s32.totalorder %s2246_s21, 0 }
   0xf   : > { %p59_p4 = por %p58_p1, %p57_p0  ;;  %p1526_p5 = scmp.ge.s32.totalorder %s2177_s20, 1 }
  0x10   : > { %p2257_p6 = por %p2547_p3, %p63_p2  ;;  %p182_p7 = scmp.lt.s32.totalorder %s2177_s20, 5 }
  0x11   : > { %s2179_s25 = smov [#allocation8]   ;;  %p1723_p10 = scmp.lt.s32.totalorder %s2177_s20, 4 }
  0x12   : > { %p2262_p8 = pnand %p1526_p5, %p182_p7  ;;  %s198_s26 = sshll.u32 %s2179_s25, 4  ;;  %s199_s26 = int_to_ptr.vmem [resolvable:$true] %s198_s26 }
  0x13   : > { %p2275_p12 = pnand %p1723_p10, %p59_p4  ;;  %s2180_s29 = smov [#allocation9]  }
  0x14   : > { %p1707_p9 = pneg %p2262_p8  ;;  %s212_s30 = sshll.u32 %s2180_s29, 4  ;;  %s213_s30 = int_to_ptr.vmem [resolvable:$true] %s212_s30 }
  0x15   : > { %s1990_s5 = scalar_lea.vmem %s199_s26, 32  ;;  %p1998_p5 = scmp.lt.s32.totalorder %s199_s26, %s199_s26 }
  0x16   : > { %p2271_p11 = pnand %p1707_p9, %p2547_p3  ;;  %p1991_p0 = scmp.ne.s32.totalorder %s199_s26, %s1990_s5 }
  0x17   : > { %p1999_p7 = scmp.lt.s32.totalorder %s1990_s5, %s1990_s5 }
  0x18   : > { %p1981_p13 = pneg %p2271_p11 }
  0x19   : > { %p2000_p9 = por %p1999_p7, %p1998_p5 }
  0x1a   : > { %p1993_p1 = pnand %p1991_p0, %p1981_p13 }
  0x1c   : > { %p1994_p2 = pneg %p1993_p1 }
  0x1e   : > { %p2001_p3 = pnand %p2000_p9, %p1994_p2 }
  0x20   : > { %2004 = shalt.err (!%p2001_p3)
}
  0x21   : > { %s2556_s2 = sld [smem:[#allocation19_spill]]  ;;  %s34_s8 = sadd.s32 1, %s2173_s19 }
  0x22   : > { %s2016_s9 = scalar_lea.vmem %s213_s30, 32  ;;  %p2024_p1 = scmp.lt.s32.totalorder %s213_s30, %s213_s30 }
  0x23   : > { %p2017_p4 = scmp.ne.s32.totalorder %s213_s30, %s2016_s9  ;;  %p2025_p5 = scmp.lt.s32.totalorder %s2016_s9, %s2016_s9 }
  0x25   : > { %p2019_p10 = pnand %p2017_p4, %p1981_p13  ;;  %p2026_p2 = por %p2025_p5, %p2024_p1 }
  0x27   : > { %1710 = dma.hbm_to_vmem [thread:$0]  (!%p2271_p11), %s2556_s2, 32, %s199_s26, [#allocation7]  }
  0x28   : > { %p2020_p0 = pneg %p2019_p10 }
  0x2a   : > { %p2027_p3 = pnand %p2026_p2, %p2020_p0 }
  0x2c   : > { %2030 = shalt.err (!%p2027_p3)
}
  0x2d   : > { %s2557_s3 = sld [smem:[#allocation20_spill]]  ;;  %p35_p7 = scmp.ge.s32.totalorder %s34_s8, 4 }
  0x2e   : > { %s2299_s12 = sand.u32 1, %s2165_s17   ;;  %s1686_s14 = sshll.u32 %s2173_s19, 9 }
  0x2f   : > { %s1530_s13 = sshll.u32 %s2299_s12, 6  ;;  %s2571_s8 = smov (%p35_p7, %s34_s8), 0 }
  0x30   : > { %2558 = sst [smem:[#allocation17_spill]] %s2571_s8  ;;  %s46_s15 = ssub.s32 %s2173_s19, %s2571_s8 }
  0x31   : > { %s2559_s0 = sld [smem:[#allocation18_spill]]  ;;  %p48_p13 = scmp.eq.s32.totalorder %s46_s15, 0 }
  0x32   : > { %s227_s29 = scalar_lea.vmem [#allocation3], %s1530_s13  ;;  %s224_s6 = scalar_lea.sflag [#allocation4], %s2299_s12 }
  0x33   : > { %1713 = dma.hbm_to_vmem [thread:$0]  (!%p2271_p11), %s2557_s3, 32, %s213_s30, [#allocation10]  }
  0x34   : > { %s237_s5 = sshll.u32 %s227_s29, 4  ;;  %p2033_p11 = pneg %p2275_p12  ;;  %s238_s5 = int_to_ptr.vmem [resolvable:$true] %s237_s5 }
  0x35   : > { %s2313_s30 = scalar_select %p48_p13, %s2165_s17, %s50_s22  }
  0x36   : > { %s2044_s7 = scalar_lea.vmem %s238_s5, 1024  ;;  %s2181_s9 = smov [#allocation3]  }
  0x37   : > { %s236_s27 = scalar_lea.hbm %s2559_s0, %s1686_s14  ;;  %p2045_p9 = scmp.ne.s32.totalorder %s238_s5, %s2044_s7 }
  0x38   : > { %s2049_s10 = sshll.u32 %s2181_s9, 4  ;;  %s2050_s10 = int_to_ptr.vmem [resolvable:$false] %s2049_s10 }
  0x39   : > { %p2047_p4 = pnand %p2045_p9, %p2033_p11  ;;  %s2051_s11 = scalar_lea.vmem %s2050_s10, 2048 }
  0x3a   : > { %p2052_p0 = scmp.lt.s32.totalorder %s238_s5, %s2050_s10  ;;  %p2053_p1 = scmp.lt.s32.totalorder %s2051_s11, %s2044_s7 }
  0x3b   : > { %p2048_p10 = pneg %p2047_p4 }
  0x3c   : > { %p2054_p5 = por %p2053_p1, %p2052_p0 }
  0x3e   : > { %p2055_p2 = pnand %p2054_p5, %p2048_p10 }
  0x40   : > { %2058 = shalt.err (!%p2055_p2)
}
  0x41   : > { %s2182_s22 = smov 2048   ;;  %s2183_s13 = smov 512  }
  0x42   : > { %s2184_s14 = smov 32   ;;  %s247_s15 = sand.u32 1, %s2177_s20  }
  0x43   : > { %1717 = dma.hbm_to_vmem [thread:$0]  (!%p2275_p12), %s236_s27, 1024, %s238_s5, %s224_s6, %s2182_s22, %s2183_s13, %s2184_s14  }
  0x44   : > { %s1533_s25 = sshll.u32 %s2299_s12, 10  ;;  %s1688_s26 = sshll.u32 %s2173_s19, 14 }
  0x45   : > { %s251_s29 = scalar_lea.vmem [#allocation6], %s1533_s25  ;;  %s260_s11 = scalar_lea.hbm %s2543_s1, %s1688_s26 }
  0x46   : > { %s261_s9 = sshll.u32 %s251_s29, 4  ;;  %s248_s0 = scalar_lea.sflag [#allocation7], %s247_s15  ;;  %s262_s9 = int_to_ptr.vmem [resolvable:$true] %s261_s9 }
  0x47   : > { %s2072_s2 = scalar_lea.vmem %s262_s9, 16384  ;;  %s2185_s3 = smov [#allocation6]  }
  0x48   : > { %p2073_p3 = scmp.ne.s32.totalorder %s262_s9, %s2072_s2  ;;  %s2077_s8 = sshll.u32 %s2185_s3, 4  ;;  %s2078_s8 = int_to_ptr.vmem [resolvable:$false] %s2077_s8 }
  0x49   : > { %s2079_s27 = scalar_lea.vmem %s2078_s8, 32768  ;;  %p2080_p9 = scmp.lt.s32.totalorder %s262_s9, %s2078_s8 }
  0x4a   : > { %p2075_p7 = pnand %p2073_p3, %p2033_p11  ;;  %p2081_p4 = scmp.lt.s32.totalorder %s2079_s27, %s2072_s2 }
  0x4c   : > { %p2076_p13 = pneg %p2075_p7  ;;  %p2082_p10 = por %p2081_p4, %p2080_p9 }
  0x4e   : > { %p2083_p0 = pnand %p2082_p10, %p2076_p13 }
  0x50   : > { %2086 = shalt.err (!%p2083_p0)
}
  0x51   : > { %s2186_s12 = smov 128   ;;  %s2187_s5 = smov 8  }
  0x52   : > { %1720 = dma.hbm_to_vmem [thread:$0]  (!%p2275_p12), %s260_s11, 16384, %s262_s9, %s248_s0, %s2186_s12, %s2186_s12, %s2187_s5  }
  0x53   : > { %273 = sbr.rel (%p2262_p8) target bundleno = 474 (0x1da), region = 36  ;;  %s275_s6 = sand.u32 (!%p2262_p8), 1, %s2161_s16  }
  0x54   : > { %s1538_s22 = sshll.u32 (!%p2262_p8), %s275_s6, 6  ;;  %s276_s3 = scalar_lea.sflag (!%p2262_p8), [#allocation4], %s275_s6 }
  0x55   : > { %s2337_s13 = scalar_lea.vmem (!%p2262_p8), [#allocation3], %s1538_s22 }
  0x58   : > { %2136 = dma.done.wait (%p2257_p6), %s276_s3, 1024  }
  0x59   : > { %2138 = vsyncadd (%p2257_p6), %s276_s3, 4294966272  ;;  %s284_s2 = sand.u32 1, %s2246_s21   ;;  %s1539_s28 = sshll.u32 %s275_s6, 10 }
  0x5a   : > { %s285_s0 = scalar_lea.sflag [#allocation7], %s284_s2  ;;  %s2344_s8 = scalar_lea.vmem [#allocation6], %s1539_s28 }
  0x5b   : > { %2140 = dma.done.wait (%p2257_p6), %s285_s0, 16384  }
  0x5c   : > { %2142 = vsyncadd (%p2257_p6), %s285_s0, 4294950912  ;;  %p2560_p8 = scmp.eq.s32.totalorder %s2246_s21, 0 }
  0x5e   : > { %2144 = dma.done.wait (%p2560_p8), [#allocation7], 32   ;;  %p2561_p12 = pmov %p2560_p8 }
  0x5f   : > { %p2562_p11 = pmov %p2560_p8 }
  0x60   : > { %2146 = vsyncadd (%p2561_p12), [#allocation7], 4294967264 }
  0x61   : > { %2148 = dma.done.wait (%p2562_p11), [#allocation10], 32   ;;  %p2563_p1 = pmov %p2560_p8 }
  0x62   : > { %p1542_p5 = scmp.ne.s32.totalorder %s2169_s18, 0 }
  0x63   : > { %2150 = vsyncadd (%p2563_p1), [#allocation10], 4294967264 }
  0x64   : > { %332 = sbr.rel (%p1542_p5) target bundleno = 108 (0x6c), region = 56 }
  0x69   : > { %v2188_v0 = vmov 0.0  }
  0x6a   : > { %333 = vst [vmem:[#allocation2 + $0x10] sm:$0xff] %v2188_v0  ;;  %334 = vst [vmem:[#allocation2] sm:$0xff] %v2188_v0 }
  0x6b   : > { %335 = vst [vmem:[#allocation2 + $0x18] sm:$0xff] %v2188_v0  ;;  %336 = vst [vmem:[#allocation2 + $0x8] sm:$0xff] %v2188_v0 }
  0x6c PF: > { %v1787_v1 = vld [vmem:[%s2344_s8 + $0x74] ss:$8 sps:$4 sm:$0xff]   ;;  %v1791_v3 = vld [vmem:[%s2344_s8 + $0x70] ss:$8 sps:$4 sm:$0xff]   ;;  %v1793_v5 = vld [vmem:[%s2344_s8 + $0x64] ss:$8 sps:$4 sm:$0xff]  }
  0x6d   : > { %v1789_v2 = vld [vmem:[%s2344_s8 + $0x174] ss:$8 sps:$4 sm:$0xff]   ;;  %1157 = vmatprep.subr.bf16.mxu0 %v1787_v1  ;;  %v1792_v4 = vld [vmem:[%s2344_s8 + $0x170] ss:$8 sps:$4 sm:$0xff]   ;;  %v1795_v6 = vld [vmem:[%s2344_s8 + $0x164] ss:$8 sps:$4 sm:$0xff]  }
  0x6e   : > { %1200 = vmatprep.subr.bf16.mxu1 %v1789_v2  ;;  %1158 = vmatpush1.bf16.msra.mxu0 %v1791_v3  ;;  %v1797_v7 = vld [vmem:[%s2344_s8 + $0x60] ss:$8 sps:$4 sm:$0xff]   ;;  %v1799_v9 = vld [vmem:[%s2344_s8 + $0x54] ss:$8 sps:$4 sm:$0xff]   ;;  %v1803_v11 = vld [vmem:[%s2344_s8 + $0x50] ss:$8 sps:$4 sm:$0xff]  }
  0x6f   : > { %1201 = vmatpush1.bf16.msra.mxu1 %v1792_v4  ;;  %1159 = vmatprep.subr.bf16.mxu0 %v1793_v5  ;;  %v1798_v8 = vld [vmem:[%s2344_s8 + $0x160] ss:$8 sps:$4 sm:$0xff]   ;;  %v1801_v10 = vld [vmem:[%s2344_s8 + $0x154] ss:$8 sps:$4 sm:$0xff]   ;;  %v1804_v12 = vld [vmem:[%s2344_s8 + $0x150] ss:$8 sps:$4 sm:$0xff]  }
  0x70   : > { %1202 = vmatprep.subr.bf16.mxu1 %v1795_v6  ;;  %v1805_v13 = vld [vmem:[%s2344_s8 + $0x44] ss:$8 sps:$4 sm:$0xff]   ;;  %v1809_v15 = vld [vmem:[%s2344_s8 + $0x40] ss:$8 sps:$4 sm:$0xff]   ;;  %v1811_v17 = vld [vmem:[%s2344_s8 + $0x34] ss:$8 sps:$4 sm:$0xff]  }
  0x71   : > { %v1807_v14 = vld [vmem:[%s2344_s8 + $0x144] ss:$8 sps:$4 sm:$0xff]   ;;  %v1810_v16 = vld [vmem:[%s2344_s8 + $0x140] ss:$8 sps:$4 sm:$0xff]   ;;  %v1813_v18 = vld [vmem:[%s2344_s8 + $0x134] ss:$8 sps:$4 sm:$0xff]  }
  0x72   : > { %1160 = vmatpush1.bf16.msra.mxu0 %v1797_v7  ;;  %v1815_v19 = vld [vmem:[%s2344_s8 + $0x30] ss:$8 sps:$4 sm:$0xff]   ;;  %v1817_v21 = vld [vmem:[%s2344_s8 + $0x24] ss:$8 sps:$4 sm:$0xff]   ;;  %v1821_v23 = vld [vmem:[%s2344_s8 + $0x20] ss:$8 sps:$4 sm:$0xff]  }
  0x73   : > { %1203 = vmatpush1.bf16.msra.mxu1 %v1798_v8  ;;  %1161 = vmatprep.subr.bf16.mxu0 %v1799_v9  ;;  %v1816_v20 = vld [vmem:[%s2344_s8 + $0x130] ss:$8 sps:$4 sm:$0xff]   ;;  %v1819_v22 = vld [vmem:[%s2344_s8 + $0x124] ss:$8 sps:$4 sm:$0xff]   ;;  %v1822_v24 = vld [vmem:[%s2344_s8 + $0x120] ss:$8 sps:$4 sm:$0xff]  }
  0x74   : > { %1204 = vmatprep.subr.bf16.mxu1 %v1801_v10  ;;  %v1823_v25 = vld [vmem:[%s2344_s8 + $0x14] ss:$8 sps:$4 sm:$0xff]   ;;  %v1827_v27 = vld [vmem:[%s2344_s8 + $0x10] ss:$8 sps:$4 sm:$0xff]   ;;  %v1829_v29 = vld [vmem:[%s2344_s8 + $0x4] ss:$8 sps:$4 sm:$0xff]  }
  0x75   : > { %v1825_v26 = vld [vmem:[%s2344_s8 + $0x114] ss:$8 sps:$4 sm:$0xff]   ;;  %v1828_v28 = vld [vmem:[%s2344_s8 + $0x110] ss:$8 sps:$4 sm:$0xff]   ;;  %v1831_v30 = vld [vmem:[%s2344_s8 + $0x104] ss:$8 sps:$4 sm:$0xff]  }
  0x76   : > { %1162 = vmatpush1.bf16.msra.mxu0 %v1803_v11  ;;  %v1833_v31 = vld [vmem:[%s2344_s8] ss:$8 sps:$4 sm:$0xff]   ;;  %v1835_v33 = vld [vmem:[%s2344_s8 + $0xf4] ss:$8 sps:$4 sm:$0xff]   ;;  %v1839_v35 = vld [vmem:[%s2344_s8 + $0xf0] ss:$8 sps:$4 sm:$0xff]  }
  0x77   : > { %1205 = vmatpush1.bf16.msra.mxu1 %v1804_v12  ;;  %1163 = vmatprep.subr.bf16.mxu0 %v1805_v13  ;;  %v1834_v32 = vld [vmem:[%s2344_s8 + $0x100] ss:$8 sps:$4 sm:$0xff]   ;;  %v1837_v34 = vld [vmem:[%s2344_s8 + $0x1f4] ss:$8 sps:$4 sm:$0xff]   ;;  %v1840_v36 = vld [vmem:[%s2344_s8 + $0x1f0] ss:$8 sps:$4 sm:$0xff]  }
  0x78   : > { %1206 = vmatprep.subr.bf16.mxu1 %v1807_v14  ;;  %v1841_v37 = vld [vmem:[%s2344_s8 + $0xe4] ss:$8 sps:$4 sm:$0xff]   ;;  %v1845_v39 = vld [vmem:[%s2344_s8 + $0xe0] ss:$8 sps:$4 sm:$0xff]   ;;  %v1847_v41 = vld [vmem:[%s2344_s8 + $0xd4] ss:$8 sps:$4 sm:$0xff]  }
  0x79   : > { %v1843_v38 = vld [vmem:[%s2344_s8 + $0x1e4] ss:$8 sps:$4 sm:$0xff]   ;;  %v1846_v40 = vld [vmem:[%s2344_s8 + $0x1e0] ss:$8 sps:$4 sm:$0xff]   ;;  %v1849_v42 = vld [vmem:[%s2344_s8 + $0x1d4] ss:$8 sps:$4 sm:$0xff]  }
  0x7a   : > { %1164 = vmatpush1.bf16.msra.mxu0 %v1809_v15  ;;  %v1851_v43 = vld [vmem:[%s2344_s8 + $0xd0] ss:$8 sps:$4 sm:$0xff]   ;;  %v1853_v45 = vld [vmem:[%s2344_s8 + $0xc4] ss:$8 sps:$4 sm:$0xff]   ;;  %v1857_v47 = vld [vmem:[%s2344_s8 + $0xc0] ss:$8 sps:$4 sm:$0xff]  }
  0x7b   : > { %1207 = vmatpush1.bf16.msra.mxu1 %v1810_v16  ;;  %1165 = vmatprep.subr.bf16.mxu0 %v1811_v17  ;;  %v1852_v44 = vld [vmem:[%s2344_s8 + $0x1d0] ss:$8 sps:$4 sm:$0xff]   ;;  %v1855_v46 = vld [vmem:[%s2344_s8 + $0x1c4] ss:$8 sps:$4 sm:$0xff]   ;;  %v1858_v48 = vld [vmem:[%s2344_s8 + $0x1c0] ss:$8 sps:$4 sm:$0xff]  }
  0x7c   : > { %1208 = vmatprep.subr.bf16.mxu1 %v1813_v18  ;;  %v341_v49 = vld [vmem:[%s2337_s13] sm:$0xff]  ;;  %v342_v51 = vld [vmem:[%s2337_s13 + $0x8] sm:$0xff]  ;;  %v1859_v53 = vld [vmem:[%s2344_s8 + $0xb4] ss:$8 sps:$4 sm:$0xff]   ;;  %p1679_p6 = scmp.ne.s32.totalorder %s2169_s18, 3 }
  0x7d   : > { %v345_v50 = vld [vmem:[%s2337_s13 + $0x20] sm:$0xff]  ;;  %v346_v52 = vld [vmem:[%s2337_s13 + $0x28] sm:$0xff]  ;;  %v1861_v55 = vld [vmem:[%s2344_s8 + $0x1b4] ss:$8 sps:$4 sm:$0xff]  }
  0x7e   : > { %1166 = vmatpush1.bf16.msra.mxu0 %v1815_v19  ;;  %v1544_v54 = vcombine.high %v341_v49, %v345_v50  ;;  %v1546_v56 = vcombine.high %v342_v51, %v346_v52  ;;  %v1863_v57 = vld [vmem:[%s2344_s8 + $0xb0] ss:$8 sps:$4 sm:$0xff]   ;;  %v1865_v59 = vld [vmem:[%s2344_s8 + $0xa4] ss:$8 sps:$4 sm:$0xff]   ;;  %v1869_v61 = vld [vmem:[%s2344_s8 + $0xa0] ss:$8 sps:$4 sm:$0xff]   ;;  %v1543_v9 = vcombine.low %v341_v49, %v345_v50  ;;  %v1545_v10 = vcombine.low %v342_v51, %v346_v52 }
  0x7f   : > { %1209 = vmatpush1.bf16.msra.mxu1 %v1816_v20  ;;  %1167 = vmatprep.subr.bf16.mxu0 %v1817_v21  ;;  %v1864_v58 = vld [vmem:[%s2344_s8 + $0x1b0] ss:$8 sps:$4 sm:$0xff]   ;;  %v1867_v60 = vld [vmem:[%s2344_s8 + $0x1a4] ss:$8 sps:$4 sm:$0xff]   ;;  %v1870_v62 = vld [vmem:[%s2344_s8 + $0x1a0] ss:$8 sps:$4 sm:$0xff]  }
  0x80   : > { %1210 = vmatprep.subr.bf16.mxu1 %v1819_v22  ;;  %1189 = vmatprep.mubr.bf16.mxu0 %v1544_v54  ;;  %v1871_v63 = vld [vmem:[%s2344_s8 + $0x94] ss:$8 sps:$4 sm:$0xff]   ;;  %v1875_v1 = vld [vmem:[%s2344_s8 + $0x90] ss:$8 sps:$4 sm:$0xff]   ;;  %v1877_v3 = vld [vmem:[%s2344_s8 + $0x84] ss:$8 sps:$4 sm:$0xff]  }
  0x81   : > { %1232 = vmatprep.mubr.bf16.mxu1 %v1546_v56  ;;  %v1873_v0 = vld [vmem:[%s2344_s8 + $0x194] ss:$8 sps:$4 sm:$0xff]   ;;  %v1876_v2 = vld [vmem:[%s2344_s8 + $0x190] ss:$8 sps:$4 sm:$0xff]   ;;  %v1879_v4 = vld [vmem:[%s2344_s8 + $0x184] ss:$8 sps:$4 sm:$0xff]  }
  0x82   : > { %1168 = vmatpush1.bf16.msra.mxu0 %v1821_v23  ;;  %v1881_v5 = vld [vmem:[%s2344_s8 + $0x80] ss:$8 sps:$4 sm:$0xff]   ;;  %v1885_v7 = vld [vmem:[%s2344_s8 + $0x274] ss:$8 sps:$4 sm:$0xff]   ;;  %v1883_v11 = vld [vmem:[%s2344_s8 + $0x270] ss:$8 sps:$4 sm:$0xff]  }
  0x83   : > { %1211 = vmatpush1.bf16.msra.mxu1 %v1822_v24  ;;  %1169 = vmatprep.subr.bf16.mxu0 %v1823_v25  ;;  %v1882_v6 = vld [vmem:[%s2344_s8 + $0x180] ss:$8 sps:$4 sm:$0xff]   ;;  %v1888_v8 = vld [vmem:[%s2344_s8 + $0x374] ss:$8 sps:$4 sm:$0xff]   ;;  %v1886_v12 = vld [vmem:[%s2344_s8 + $0x370] ss:$8 sps:$4 sm:$0xff]  }
  0x84   : > { %1212 = vmatprep.subr.bf16.mxu1 %v1825_v26  ;;  %v1891_v13 = vld [vmem:[%s2344_s8 + $0x264] ss:$8 sps:$4 sm:$0xff]   ;;  %v1889_v15 = vld [vmem:[%s2344_s8 + $0x260] ss:$8 sps:$4 sm:$0xff]   ;;  %v1897_v17 = vld [vmem:[%s2344_s8 + $0x254] ss:$8 sps:$4 sm:$0xff]  }
  0x85   : > { %v1894_v14 = vld [vmem:[%s2344_s8 + $0x364] ss:$8 sps:$4 sm:$0xff]   ;;  %v1892_v16 = vld [vmem:[%s2344_s8 + $0x360] ss:$8 sps:$4 sm:$0xff]   ;;  %v1900_v18 = vld [vmem:[%s2344_s8 + $0x354] ss:$8 sps:$4 sm:$0xff]  }
  0x86   : > { %1170 = vmatpush1.bf16.msra.mxu0 %v1827_v27  ;;  %v1895_v19 = vld [vmem:[%s2344_s8 + $0x250] ss:$8 sps:$4 sm:$0xff]   ;;  %v1903_v21 = vld [vmem:[%s2344_s8 + $0x244] ss:$8 sps:$4 sm:$0xff]   ;;  %v1901_v23 = vld [vmem:[%s2344_s8 + $0x240] ss:$8 sps:$4 sm:$0xff]  }
  0x87   : > { %1213 = vmatpush1.bf16.msra.mxu1 %v1828_v28  ;;  %1171 = vmatprep.subr.bf16.mxu0 %v1829_v29  ;;  %v1898_v20 = vld [vmem:[%s2344_s8 + $0x350] ss:$8 sps:$4 sm:$0xff]   ;;  %v1906_v22 = vld [vmem:[%s2344_s8 + $0x344] ss:$8 sps:$4 sm:$0xff]   ;;  %v1904_v24 = vld [vmem:[%s2344_s8 + $0x340] ss:$8 sps:$4 sm:$0xff]  }
  0x88   : > { %1214 = vmatprep.subr.bf16.mxu1 %v1831_v30  ;;  %v1909_v25 = vld [vmem:[%s2344_s8 + $0x234] ss:$8 sps:$4 sm:$0xff]   ;;  %v1907_v27 = vld [vmem:[%s2344_s8 + $0x230] ss:$8 sps:$4 sm:$0xff]   ;;  %v1915_v29 = vld [vmem:[%s2344_s8 + $0x224] ss:$8 sps:$4 sm:$0xff]  }
  0x89   : > { %v1912_v26 = vld [vmem:[%s2344_s8 + $0x334] ss:$8 sps:$4 sm:$0xff]   ;;  %v1910_v28 = vld [vmem:[%s2344_s8 + $0x330] ss:$8 sps:$4 sm:$0xff]   ;;  %v1918_v30 = vld [vmem:[%s2344_s8 + $0x324] ss:$8 sps:$4 sm:$0xff]  }
  0x8a   : > { %1172 = vmatpush1.bf16.msra.mxu0 %v1833_v31  ;;  %v1913_v31 = vld [vmem:[%s2344_s8 + $0x220] ss:$8 sps:$4 sm:$0xff]   ;;  %v1931_v49 = vld [vmem:[%s2344_s8 + $0x2f0] ss:$8 sps:$4 sm:$0xff]   ;;  %v1939_v51 = vld [vmem:[%s2344_s8 + $0x2e4] ss:$8 sps:$4 sm:$0xff]  }
  0x8b   : > { %1215 = vmatpush1.bf16.msra.mxu1 %v1834_v32  ;;  %1173 = vmatprep.subr.bf16.mxu0 %v1835_v33  ;;  %v1916_v32 = vld [vmem:[%s2344_s8 + $0x320] ss:$8 sps:$4 sm:$0xff]   ;;  %v1921_v33 = vld [vmem:[%s2344_s8 + $0x214] ss:$8 sps:$4 sm:$0xff]   ;;  %v1934_v50 = vld [vmem:[%s2344_s8 + $0x3f0] ss:$8 sps:$4 sm:$0xff]  }
  0x8c   : > { %1216 = vmatprep.subr.bf16.mxu1 %v1837_v34  ;;  %v1924_v34 = vld [vmem:[%s2344_s8 + $0x314] ss:$8 sps:$4 sm:$0xff]   ;;  %v1942_v52 = vld [vmem:[%s2344_s8 + $0x3e4] ss:$8 sps:$4 sm:$0xff]   ;;  %v1940_v54 = vld [vmem:[%s2344_s8 + $0x3e0] ss:$8 sps:$4 sm:$0xff]  }
  0x8d   : > { %v1948_v56 = vld [vmem:[%s2344_s8 + $0x3d4] ss:$8 sps:$4 sm:$0xff]  }
  0x8e   : > { %1174 = vmatpush2.bf16.msra.mxu0 %v1839_v35  ;;  %v2454_v35 = vld [vmem:[%s2337_s13 + $0x10] sm:$0xff] }
  0x8f   : > { %1217 = vmatpush2.bf16.msra.mxu1 %v1840_v36  ;;  %1175 = vmatprep.subr.bf16.mxu0 %v1841_v37  ;;  %v2457_v36 = vld [vmem:[%s2337_s13 + $0x30] sm:$0xff]  ;;  %v2460_v37 = vld [vmem:[%s2337_s13 + $0x18] sm:$0xff] }
  0x90   : > { %1218 = vmatprep.subr.bf16.mxu1 %v1843_v38  ;;  %v2463_v38 = vld [vmem:[%s2337_s13 + $0x38] sm:$0xff] }
  0x92   : > { %1176 = vmatpush2.bf16.msra.mxu0 %v1845_v39  ;;  %v1919_v39 = vld [vmem:[%s2344_s8 + $0x210] ss:$8 sps:$4 sm:$0xff]  }
  0x93   : > { %1219 = vmatpush2.bf16.msra.mxu1 %v1846_v40  ;;  %1177 = vmatprep.subr.bf16.mxu0 %v1847_v41  ;;  %v1922_v40 = vld [vmem:[%s2344_s8 + $0x310] ss:$8 sps:$4 sm:$0xff]   ;;  %v1548_v41 = vcombine.high %v2454_v35, %v2457_v36 }
  0x94   : > { %1220 = vmatprep.subr.bf16.mxu1 %v1849_v42  ;;  %v1927_v42 = vld [vmem:[%s2344_s8 + $0x204] ss:$8 sps:$4 sm:$0xff]  }
  0x96   : > { %1178 = vmatpush2.bf16.msra.mxu0 %v1851_v43  ;;  %v1930_v43 = vld [vmem:[%s2344_s8 + $0x304] ss:$8 sps:$4 sm:$0xff]  }
  0x97   : > { %1221 = vmatpush2.bf16.msra.mxu1 %v1852_v44  ;;  %1179 = vmatprep.subr.bf16.mxu0 %v1853_v45  ;;  %v1550_v44 = vcombine.high %v2460_v37, %v2463_v38  ;;  %v1925_v45 = vld [vmem:[%s2344_s8 + $0x200] ss:$8 sps:$4 sm:$0xff]  }
  0x98   : > { %1222 = vmatprep.subr.bf16.mxu1 %v1855_v46  ;;  %v1928_v46 = vld [vmem:[%s2344_s8 + $0x300] ss:$8 sps:$4 sm:$0xff]  }
  0x9a   : > { %1180 = vmatpush2.bf16.msra.mxu0 %v1857_v47  ;;  %v1933_v47 = vld [vmem:[%s2344_s8 + $0x2f4] ss:$8 sps:$4 sm:$0xff]  }
  0x9b   : > { %1223 = vmatpush2.bf16.msra.mxu1 %v1858_v48  ;;  %1181 = vmatprep.subr.bf16.mxu0 %v1859_v53  ;;  %v1936_v48 = vld [vmem:[%s2344_s8 + $0x3f4] ss:$8 sps:$4 sm:$0xff]   ;;  %v1937_v53 = vld [vmem:[%s2344_s8 + $0x2e0] ss:$8 sps:$4 sm:$0xff]  }
  0x9c   : > { %1224 = vmatprep.subr.bf16.mxu1 %v1861_v55  ;;  %v1945_v55 = vld [vmem:[%s2344_s8 + $0x2d4] ss:$8 sps:$4 sm:$0xff]  }
  0x9e   : > { %1182 = vmatpush2.bf16.msra.mxu0 %v1863_v57  ;;  %v1943_v57 = vld [vmem:[%s2344_s8 + $0x2d0] ss:$8 sps:$4 sm:$0xff]  }
  0x9f   : > { %1225 = vmatpush2.bf16.msra.mxu1 %v1864_v58  ;;  %1183 = vmatprep.subr.bf16.mxu0 %v1865_v59  ;;  %v1946_v58 = vld [vmem:[%s2344_s8 + $0x3d0] ss:$8 sps:$4 sm:$0xff]   ;;  %v1951_v59 = vld [vmem:[%s2344_s8 + $0x2c4] ss:$8 sps:$4 sm:$0xff]  }
  0xa0   : > { %1226 = vmatprep.subr.bf16.mxu1 %v1867_v60  ;;  %v1954_v60 = vld [vmem:[%s2344_s8 + $0x3c4] ss:$8 sps:$4 sm:$0xff]  }
  0xa2   : > { %1184 = vmatpush2.bf16.msra.mxu0 %v1869_v61  ;;  %v1949_v61 = vld [vmem:[%s2344_s8 + $0x2c0] ss:$8 sps:$4 sm:$0xff]  }
  0xa3   : > { %1227 = vmatpush2.bf16.msra.mxu1 %v1870_v62  ;;  %1185 = vmatprep.subr.bf16.mxu0 %v1871_v63  ;;  %v1952_v62 = vld [vmem:[%s2344_s8 + $0x3c0] ss:$8 sps:$4 sm:$0xff]   ;;  %v1957_v63 = vld [vmem:[%s2344_s8 + $0x2b4] ss:$8 sps:$4 sm:$0xff]  }
  0xa4   : > { %1228 = vmatprep.subr.bf16.mxu1 %v1873_v0  ;;  %v1960_v0 = vld [vmem:[%s2344_s8 + $0x3b4] ss:$8 sps:$4 sm:$0xff]  }
  0xa6   : > { %1186 = vmatpush2.bf16.msra.mxu0 %v1875_v1  ;;  %v1955_v1 = vld [vmem:[%s2344_s8 + $0x2b0] ss:$8 sps:$4 sm:$0xff]  }
  0xa7   : > { %1229 = vmatpush2.bf16.msra.mxu1 %v1876_v2  ;;  %1187 = vmatprep.subr.bf16.mxu0 %v1877_v3  ;;  %v1958_v2 = vld [vmem:[%s2344_s8 + $0x3b0] ss:$8 sps:$4 sm:$0xff]   ;;  %v1963_v3 = vld [vmem:[%s2344_s8 + $0x2a4] ss:$8 sps:$4 sm:$0xff]  }
  0xa8   : > { %1230 = vmatprep.subr.bf16.mxu1 %v1879_v4  ;;  %v1966_v4 = vld [vmem:[%s2344_s8 + $0x3a4] ss:$8 sps:$4 sm:$0xff]  }
  0xaa   : > { %1188 = vmatpush2.bf16.msra.mxu0 %v1881_v5  ;;  %v1961_v5 = vld [vmem:[%s2344_s8 + $0x2a0] ss:$8 sps:$4 sm:$0xff]  }
  0xab   : > { %1231 = vmatpush2.bf16.msra.mxu1 %v1882_v6  ;;  %1243 = vmatprep.subr.bf16.mxu0 %v1885_v7  ;;  %v1964_v6 = vld [vmem:[%s2344_s8 + $0x3a0] ss:$8 sps:$4 sm:$0xff]   ;;  %v1969_v7 = vld [vmem:[%s2344_s8 + $0x294] ss:$8 sps:$4 sm:$0xff]  }
  0xac   : > { %1286 = vmatprep.subr.bf16.mxu1 %v1888_v8  ;;  %v1972_v8 = vld [vmem:[%s2344_s8 + $0x394] ss:$8 sps:$4 sm:$0xff]  }
  0xad   : > { %1190 = vmatmul.mubr.bf16.vlgmr.msra.gmra.mxu0 %v1543_v9  ;;  %v1967_v9 = vld [vmem:[%s2344_s8 + $0x290] ss:$8 sps:$4 sm:$0xff]  }
  0xae   : > { %1233 = vmatmul.mubr.bf16.vlgmr.msra.gmra.mxu1 %v1545_v10  ;;  %1244 = vmatpush1.bf16.msra.mxu0 %v1883_v11  ;;  %v1970_v10 = vld [vmem:[%s2344_s8 + $0x390] ss:$8 sps:$4 sm:$0xff]   ;;  %v1975_v11 = vld [vmem:[%s2344_s8 + $0x284] ss:$8 sps:$4 sm:$0xff]  }
  0xaf   : > { %1287 = vmatpush1.bf16.msra.mxu1 %v1886_v12  ;;  %1245 = vmatprep.subr.bf16.mxu0 %v1891_v13  ;;  %v1978_v12 = vld [vmem:[%s2344_s8 + $0x384] ss:$8 sps:$4 sm:$0xff]   ;;  %v1973_v13 = vld [vmem:[%s2344_s8 + $0x280] ss:$8 sps:$4 sm:$0xff]  }
  0xb0   : > { %1288 = vmatprep.subr.bf16.mxu1 %v1894_v14  ;;  %1275 = vmatprep.mubr.bf16.mxu0 %v1548_v41  ;;  %v1976_v14 = vld [vmem:[%s2344_s8 + $0x380] ss:$8 sps:$4 sm:$0xff]  }
  0xb1   : > { %1318 = vmatprep.mubr.bf16.mxu1 %v1550_v44 }
  0xb2   : > { %1246 = vmatpush1.bf16.msra.mxu0 %v1889_v15  ;;  %v1547_v15 = vcombine.low %v2454_v35, %v2457_v36  ;;  %v338_v36 = vld [vmem:[#allocation2] sm:$0xff] }
  0xb3   : > { %1289 = vmatpush1.bf16.msra.mxu1 %v1892_v16  ;;  %1247 = vmatprep.subr.bf16.mxu0 %v1897_v17  ;;  %v1549_v16 = vcombine.low %v2460_v37, %v2463_v38 }
  0xb4   : > { %1290 = vmatprep.subr.bf16.mxu1 %v1900_v18 }
  0xb6   : > { %1248 = vmatpush1.bf16.msra.mxu0 %v1895_v19 }
  0xb7   : > { %1291 = vmatpush1.bf16.msra.mxu1 %v1898_v20  ;;  %1249 = vmatprep.subr.bf16.mxu0 %v1903_v21 }
  0xb8   : > { %1292 = vmatprep.subr.bf16.mxu1 %v1906_v22 }
  0xba   : > { %1250 = vmatpush1.bf16.msra.mxu0 %v1901_v23 }
  0xbb   : > { %1293 = vmatpush1.bf16.msra.mxu1 %v1904_v24  ;;  %1251 = vmatprep.subr.bf16.mxu0 %v1909_v25 }
  0xbc   : > { %1294 = vmatprep.subr.bf16.mxu1 %v1912_v26 }
  0xbe   : > { %1252 = vmatpush1.bf16.msra.mxu0 %v1907_v27 }
  0xbf   : > { %1295 = vmatpush1.bf16.msra.mxu1 %v1910_v28  ;;  %1253 = vmatprep.subr.bf16.mxu0 %v1915_v29 }
  0xc0   : > { %1296 = vmatprep.subr.bf16.mxu1 %v1918_v30  ;;  %v337_v30 = vld [vmem:[#allocation2 + $0x10] sm:$0xff] }
  0xc2   : > { %1254 = vmatpush1.bf16.msra.mxu0 %v1913_v31 }
  0xc3   : > { %1297 = vmatpush1.bf16.msra.mxu1 %v1916_v32  ;;  %1255 = vmatprep.subr.bf16.mxu0 %v1921_v33 }
  0xc4   : > { %1298 = vmatprep.subr.bf16.mxu1 %v1924_v34 }
  0xc6   : > { %1256 = vmatpush1.bf16.msra.mxu0 %v1919_v39 }
  0xc7   : > { %1299 = vmatpush1.bf16.msra.mxu1 %v1922_v40  ;;  %1257 = vmatprep.subr.bf16.mxu0 %v1927_v42 }
  0xc8   : > { %1300 = vmatprep.subr.bf16.mxu1 %v1930_v43  ;;  %v339_v43 = vld [vmem:[#allocation2 + $0x18] sm:$0xff] }
  0xca   : > { %1258 = vmatpush1.bf16.msra.mxu0 %v1925_v45 }
  0xcb   : > { %1301 = vmatpush1.bf16.msra.mxu1 %v1928_v46  ;;  %1259 = vmatprep.subr.bf16.mxu0 %v1933_v47 }
  0xcc   : > { %1302 = vmatprep.subr.bf16.mxu1 %v1936_v48  ;;  %v340_v48 = vld [vmem:[#allocation2 + $0x8] sm:$0xff] }
  0xce   : > { %1260 = vmatpush2.bf16.msra.mxu0 %v1931_v49 }
  0xcf   : > { %1303 = vmatpush2.bf16.msra.mxu1 %v1934_v50  ;;  %1261 = vmatprep.subr.bf16.mxu0 %v1939_v51 }
  0xd0   : > { %1304 = vmatprep.subr.bf16.mxu1 %v1942_v52 }
  0xd2   : > { %1262 = vmatpush2.bf16.msra.mxu0 %v1937_v53 }
  0xd3   : > { %1305 = vmatpush2.bf16.msra.mxu1 %v1940_v54  ;;  %1263 = vmatprep.subr.bf16.mxu0 %v1945_v55 }
  0xd4   : > { %1306 = vmatprep.subr.bf16.mxu1 %v1948_v56 }
  0xd6   : > { %1264 = vmatpush2.bf16.msra.mxu0 %v1943_v57 }
  0xd7   : > { %1307 = vmatpush2.bf16.msra.mxu1 %v1946_v58  ;;  %1265 = vmatprep.subr.bf16.mxu0 %v1951_v59 }
  0xd8   : > { %1308 = vmatprep.subr.bf16.mxu1 %v1954_v60 }
  0xda   : > { %1266 = vmatpush2.bf16.msra.mxu0 %v1949_v61 }
  0xdb   : > { %1309 = vmatpush2.bf16.msra.mxu1 %v1952_v62  ;;  %1267 = vmatprep.subr.bf16.mxu0 %v1957_v63 }
  0xdc   : > { %1310 = vmatprep.subr.bf16.mxu1 %v1960_v0 }
  0xde   : > { %1268 = vmatpush2.bf16.msra.mxu0 %v1955_v1 }
  0xdf   : > { %1311 = vmatpush2.bf16.msra.mxu1 %v1958_v2  ;;  %1269 = vmatprep.subr.bf16.mxu0 %v1963_v3 }
  0xe0   : > { %1312 = vmatprep.subr.bf16.mxu1 %v1966_v4 }
  0xe2   : > { %1270 = vmatpush2.bf16.msra.mxu0 %v1961_v5 }
  0xe3   : > { %1313 = vmatpush2.bf16.msra.mxu1 %v1964_v6  ;;  %1271 = vmatprep.subr.bf16.mxu0 %v1969_v7 }
  0xe4   : > { %1314 = vmatprep.subr.bf16.mxu1 %v1972_v8 }
  0xe6   : > { %1272 = vmatpush2.bf16.msra.mxu0 %v1967_v9 }
  0xe7   : > { %1315 = vmatpush2.bf16.msra.mxu1 %v1970_v10  ;;  %1273 = vmatprep.subr.bf16.mxu0 %v1975_v11 }
  0xe8   : > { %1316 = vmatprep.subr.bf16.mxu1 %v1978_v12 }
  0xea   : > { %1274 = vmatpush2.bf16.msra.mxu0 %v1973_v13 }
  0xeb   : > { %1317 = vmatpush2.bf16.msra.mxu1 %v1976_v14 }
  0xed   : > { %1276 = vmatmul.mubr.bf16.vlgmr.msra.gmra.mxu0 %v1547_v15 }
  0xee   : > { %1319 = vmatmul.mubr.bf16.vlgmr.msra.gmra.mxu1 %v1549_v16 }
 0x16d   : > { %v1191_v17 = vpop.f32.mrf.mxu0 }
 0x16e   : > { %v1234_v18 = vpop.f32.mrf.mxu1 }
 0x16f   : > { %v1193_v19 = vpop.f32.mrf.mxu0  ;;  %v1235_v25 = vadd.f32 %v1234_v18, %v1191_v17 }
 0x170   : > { %v1236_v20 = vpop.f32.mrf.mxu1 }
 0x171   : > { %v1195_v21 = vpop.f32.mrf.mxu0  ;;  %v1237_v28 = vadd.f32 %v1236_v20, %v1193_v19 }
 0x172   : > { %v1238_v22 = vpop.f32.mrf.mxu1 }
 0x173   : > { %v1197_v23 = vpop.f32.mrf.mxu0  ;;  %v1239_v33 = vadd.f32 %v1238_v22, %v1195_v21 }
 0x174   : > { %v1240_v24 = vpop.f32.mrf.mxu1 }
 0x175   : > { %v1241_v39 = vadd.f32 %v1240_v24, %v1197_v23 }
 0x1ad   : > { %v1277_v26 = vpop.f32.mrf.mxu0 }
 0x1ae   : > { %v1320_v27 = vpop.f32.mrf.mxu1  ;;  %v1278_v29 = vadd.f32 %v1277_v26, %v1235_v25 }
 0x1af   : > { %v1279_v31 = vpop.f32.mrf.mxu0 }
 0x1b0   : > { %v1322_v32 = vpop.f32.mrf.mxu1  ;;  %v1321_v34 = vadd.f32 %v1320_v27, %v1278_v29  ;;  %v1280_v35 = vadd.f32 %v1279_v31, %v1237_v28 }
 0x1b1   : > { %v1281_v37 = vpop.f32.mrf.mxu0 }
 0x1b2   : > { %v1324_v38 = vpop.f32.mrf.mxu1  ;;  %v1329_v40 = vadd.f32 %v1321_v34, %v337_v30  ;;  %v1323_v41 = vadd.f32 %v1322_v32, %v1280_v35  ;;  %v1282_v42 = vadd.f32 %v1281_v37, %v1239_v33 }
 0x1b3   : > { %v1283_v44 = vpop.f32.mrf.mxu0 }
 0x1b4   : > { %1333 = vst [vmem:[#allocation2 + $0x10] sm:$0xff] %v1329_v40  ;;  %v1330_v45 = vadd.f32 %v1323_v41, %v338_v36  ;;  %v1325_v46 = vadd.f32 %v1324_v38, %v1282_v42  ;;  %v1284_v47 = vadd.f32 %v1283_v44, %v1241_v39  ;;  %v1326_v49 = vpop.f32.mrf.mxu1 }
 0x1b6   : > { %1334 = vst [vmem:[#allocation2] sm:$0xff] %v1330_v45  ;;  %v1331_v50 = vadd.f32 %v1325_v46, %v339_v43  ;;  %v1327_v51 = vadd.f32 %v1326_v49, %v1284_v47  ;;  %1340 = sbr.rel (%p1679_p6) target bundleno = 458 (0x1ca), region = 60 }
 0x1b8   : > { %1335 = vst [vmem:[#allocation2 + $0x18] sm:$0xff] %v1331_v50  ;;  %v1332_v52 = vadd.f32 %v1327_v51, %v340_v48 }
 0x1ba   : > { %1336 = vst [vmem:[#allocation2 + $0x8] sm:$0xff] %v1332_v52 }
 0x1bb   : > { %v1348_v53 = vlaneseq  ;;  %v1345_v55 = vld [vmem:[#allocation8] sm:$0x3]  ;;  %v1346_v56 = vld [vmem:[#allocation9] sm:$0x3]  ;;  %v1341_v57 = vld [vmem:[#allocation2 + $0x10] sm:$0xff] }
 0x1bd   : > { %v1349_v54 = vshrl.u32 %v1348_v53, 7  ;;  %v1342_v60 = vld [vmem:[#allocation2] sm:$0xff] }
 0x1bf   : > { %v1350_v58 = vsub.s32 0, %v1349_v54  ;;  %v1354_v59 = vsub.s32 1, %v1349_v54  ;;  %v1343_v61 = vld [vmem:[#allocation2 + $0x18] sm:$0xff] }
 0x1c1   : > { %v1344_v62 = vld [vmem:[#allocation2 + $0x8] sm:$0xff]  ;;  %v1351_v63 = vrot.slane %v1345_v55, %v1350_v58  ;;  %v1355_v0 = vrot.slane %v1345_v55, %v1354_v59  ;;  %v1366_v1 = vrot.slane %v1346_v56, %v1350_v58  ;;  %v1370_v2 = vrot.slane %v1346_v56, %v1354_v59 }
 0x1c3   : > { %v1358_v3 = vmul.f32 %v1351_v63, %v1341_v57  ;;  %v1359_v4 = vmul.f32 %v1355_v0, %v1342_v60  ;;  %v1360_v5 = vmul.f32 %v1351_v63, %v1343_v61  ;;  %v1361_v6 = vmul.f32 %v1355_v0, %v1344_v62 }
 0x1c5   : > { %v1373_v7 = vadd.f32 %v1366_v1, %v1358_v3  ;;  %v1374_v8 = vadd.f32 %v1370_v2, %v1359_v4  ;;  %v1375_v9 = vadd.f32 %v1366_v1, %v1360_v5  ;;  %v1376_v10 = vadd.f32 %v1370_v2, %v1361_v6 }
 0x1c7   : > { %v1689_v11 = vpack.c.bf16 %v1374_v8, %v1373_v7  ;;  %v1690_v12 = vpack.c.bf16 %v1376_v10, %v1375_v9 }
 0x1c9   : > { %1389 = vst [vmem:[#allocation11] sm:$0xff] %v1689_v11  ;;  %1390 = vst [vmem:[#allocation11 + $0x8] sm:$0xff] %v1690_v12 }
 0x1ca PF: > { %p1726_p2 = scmp.eq.s32.totalorder %s2246_s21, 3  ;;  %s2189_s18 = smov [#allocation11]  }
 0x1cb   : > { %s1403_s23 = sshll.u32 %s2189_s18, 4  ;;  %s1404_s23 = int_to_ptr.vmem [resolvable:$true] %s1403_s23 }
 0x1cc   : > { %s2087_s24 = scalar_lea.vmem %s1404_s23, 256  ;;  %p2094_p9 = scmp.lt.s32.totalorder %s1404_s23, %s1404_s23 }
 0x1cd   : > { %p2088_p3 = scmp.ne.s32.totalorder %s1404_s23, %s2087_s24  ;;  %p2095_p4 = scmp.lt.s32.totalorder %s2087_s24, %s2087_s24 }
 0x1cf   : > { %p2089_p7 = pnand %p2088_p3, %p1726_p2  ;;  %p2096_p10 = por %p2095_p4, %p2094_p9 }
 0x1d1   : > { %p2090_p13 = pneg %p2089_p7 }
 0x1d3   : > { %p2097_p0 = pnand %p2096_p10, %p2090_p13 }
 0x1d5   : > { %2100 = shalt.err (!%p2097_p0)
}
 0x1d6   : > { %s2190_s14 = smov 128   ;;  %s2191_s15 = smov 8  }
 0x1d7   : > { %1704 = dma.vmem_to_hbm [thread:$0]  (%p1726_p2), %s1404_s23, 256, %s2546_s4, [#allocation5], %s2190_s14, %s2190_s14, %s2191_s15  }
 0x1d8   : > { %2152 = dma.done.wait (%p1726_p2), [#allocation5], 256  }
 0x1d9   : > { %2154 = vsyncadd (%p1726_p2), [#allocation5], 4294967040 }
 0x1da PF: > { %s22_s20 = sadd.s32 1, %s2177_s20   ;;  %s2564_s29 = sld [smem:[#allocation17_spill]] }
 0x1db   : > { %p19_p8 = scmp.ge.s32.totalorder %s22_s20, 6   ;;  %s2565_s15 = smov %s2161_s16 }
 0x1dc   : > { %s2566_s16 = smov %s2165_s17  ;;  %s2567_s17 = smov %s2313_s30 }
 0x1dd   : > { %s2568_s18 = smov %s2173_s19  ;;  %21 = sbr.rel (!%p19_p8) target bundleno = 12 (0xc), region = 105 }
 0x1e0   : > { %s2569_s19 = smov %s2564_s29 }
 0x1e2   :  { %1419 = vsyncpa [#allocation4], 1 }
 0x1e3   :  { %1421 = vsyncpa [#allocation4 + $0x1], 1 }
 0x1e4   :  { %1422 = vsyncpa [#allocation7], 1 }
 0x1e5   :  { %1424 = vsyncpa [#allocation7 + $0x1], 1 }
 0x1e6   :  { %1425 = vsyncpa [#allocation10], 1 }
 0x1e7   :  { %1426 = vsyncpa [#allocation5], 1 }
 0x1e8   :  { %1428 = vsyncpa [#allocation5 + $0x1], 1 }

</bundles_post_ra>
